<compile_context>
chip_gen: v7x
topology: tpu7x:2x2x1
jax: 0.10.0
libtpu: 0.0.40
codegen_flags: <defaults>
</compile_context>

<pallas_src>
import functools

import jax
import jax.numpy as jnp
from jax import lax
from jax.experimental import pallas as pl
from jax.experimental.pallas import tpu as pltpu


_NEG_BIG = -1e30   # finite "-inf": avoids (-inf) - (-inf) = NaN in the online max update


def _attention_readout_kernel(tmin_ref, tmax_ref, ftile_ref,     # scalar prefetch (SMEM)
                              n2g_ref, x_ref, w_ref, b_ref,      # inputs
                              out_ref,                           # output
                              m_ref, l_ref, acc_ref,             # scratch
                              *, n_nodes, ragged_last):
    b_idx = pl.program_id(0)
    n_idx = pl.program_id(1)
    tile_b = acc_ref.shape[0]
    tile_n = x_ref.shape[0]

    @pl.when(n_idx == 0)
    def _init():
        m_ref[...] = jnp.full(m_ref.shape, _NEG_BIG, jnp.float32)
        l_ref[...] = jnp.zeros(l_ref.shape, jnp.float32)
        acc_ref[...] = jnp.zeros(acc_ref.shape, jnp.float32)

    # Skip node tiles that share no graph with this output row-tile (sorted node2graph
    # => contiguous per-tile [min, max] graph-id ranges, prefetched into SMEM).
    g_lo = b_idx * tile_b
    overlap = jnp.logical_and(tmin_ref[n_idx] < g_lo + tile_b,
                              tmax_ref[n_idx] >= g_lo)

    @pl.when(overlap)
    def _compute():
        x = x_ref[...]                                   # (TILE_N, D), native dtype
        if ragged_last:
            # Last node tile may read past N: zero those rows so no garbage (possibly
            # inf/NaN bit patterns) can reach the MXU through 0 * garbage.
            row_ok = (n_idx * tile_n
                      + lax.broadcasted_iota(jnp.int32, (tile_n, 1), 0)) < n_nodes
            x = jnp.where(row_ok, x, jnp.zeros_like(x))

        n2g = n2g_ref[0]                                 # (1, TILE_N) int32

        # Linear(D, 1) scores as a lane-dense row: (1, D) x (TILE_N, D) contracted
        # over D (q @ k^T form -> no operand transpose / relayout).
        scores = lax.dot_general(w_ref[...], x, (((1,), (1,)), ((), ())),
                                 preferred_element_type=jnp.float32) + b_ref[0, 0]

        gid = g_lo + lax.broadcasted_iota(jnp.int32, (tile_b, tile_n), 0)
        mask = n2g == gid                                # (TILE_B, TILE_N)

        # ---- online segmented softmax (unnormalized) ----------------------------
        s_masked = jnp.where(mask, scores, _NEG_BIG)     # clamp BEFORE exp
        m_old = m_ref[...]                               # (TILE_B, 1)
        m_new = jnp.maximum(m_old, jnp.max(s_masked, axis=1, keepdims=True))
        alpha = jnp.exp(m_old - m_new)                   # (TILE_B, 1)
        # outer where keeps exact zeros (empty graphs / padded nodes contribute 0)
        e = jnp.where(mask, jnp.exp(s_masked - m_new), 0.0)   # (TILE_B, TILE_N)

        l_ref[...] = alpha * l_ref[...] + jnp.sum(e, axis=1, keepdims=True)
        m_ref[...] = m_new

        # Unnormalized weighted segment-sum on the MXU; the running-accumulator
        # rescale is a free VPU lane-broadcast (no diag matmul).
        pv = jnp.dot(e.astype(x.dtype), x, preferred_element_type=jnp.float32)
        acc_ref[...] = alpha * acc_ref[...] + pv

    @pl.when(n_idx == pl.num_programs(1) - 1)
    def _finalize():
        # Deferred softmax normalization; empty graphs keep an exact-zero row
        # (reference scatter_softmax would give NaN there; zero is the safer choice).
        l = l_ref[...]
        safe_l = jnp.where(l > 0.0, l, 1.0)
        out_ref[...] = (acc_ref[...] * pl.reciprocal(safe_l, approx=False)
                        ).astype(out_ref.dtype)


def _round_up(v, m):
    return (v + m - 1) // m * m


def attention_readout(x, node2graph, weight, bias, batch_size, *,
                      tile_n=None, tile_b=None):
    """AttentionReadout forward.

    x:          (N, D) float  node features (any float dtype; bf16 recommended)
    node2graph: (N,)   int    graph id per node, SORTED (standard batched-graph layout)
    weight:     (1, D) float  nn.Linear(D, 1).weight
    bias:       (1,)   float  nn.Linear(D, 1).bias
    batch_size: int           number of graphs
    """
    N, D = x.shape
    x_itemsize = jnp.dtype(x.dtype).itemsize

    # Graph row-tile: match the MXU M dimension.  Cap at 128 for small D so the
    # (TILE_B, TILE_N) exp plane does not make the single EUP the binding unit.
    if tile_b is None:
        tile_b = 256 if D >= 512 else 128
    tile_b = _round_up(min(tile_b, _round_up(max(batch_size, 1), 8)), 8)
    b_pad = _round_up(max(batch_size, 1), tile_b)
    num_bt = b_pad // tile_b
    # TODO(synk): when num_bt == 1 on v7x, split the node axis across the two
    # TensorCores with per-core partial accumulators + a small combine pass.

    # Node tile: as large as the VMEM budget allows (v7x-safe: 64 MiB/TC -> ~40 MiB).
    if tile_n is None:
        tile_n = 1024
    tile_n = max(8, _round_up(min(tile_n, _round_up(N, 8)), 8))

    def _vmem_need(tn):
        return (2 * tn * D * x_itemsize        # x (double-buffered)
                + 2 * tn * 4                   # node2graph tile (double-buffered)
                + 2 * D * x_itemsize           # linear weight row
                + tile_b * D * 4               # f32 accumulator scratch
                + 2 * tile_b * D * x_itemsize  # output (double-buffered)
                + 4 * tile_b * 4)              # m / l running stats

    vmem_budget = 40 * 1024 * 1024
    while tile_n > 8 and _vmem_need(tile_n) > vmem_budget:
        tile_n = max(8, _round_up(tile_n // 2, 8))
    vmem_limit = int(min(max(_vmem_need(tile_n) + (4 << 20), 32 << 20), 48 << 20))

    num_nt = pl.cdiv(N, tile_n)
    n_pad = num_nt * tile_n

    # Tiny host-side prep (node2graph / weight only; x is passed through untouched).
    n2g = jnp.asarray(node2graph).astype(jnp.int32)
    pad = n_pad - N
    n2g_min_src = jnp.pad(n2g, (0, pad), constant_values=jnp.iinfo(jnp.int32).max // 2)
    n2g_max_src = jnp.pad(n2g, (0, pad), constant_values=-1)   # padded nodes match no graph
    tile_min = n2g_min_src.reshape(num_nt, tile_n).min(axis=1)
    tile_max = n2g_max_src.reshape(num_nt, tile_n).max(axis=1)
    n2g_tiles = n2g_max_src.reshape(num_nt, 1, tile_n)         # lane-dense rows

    g_starts = jnp.arange(num_bt, dtype=jnp.int32) * tile_b
    ov = ((tile_min[None, :] < (g_starts + tile_b)[:, None])
          & (tile_max[None, :] >= g_starts[:, None]))          # (num_bt, num_nt)
    first_tile = jnp.where(ov.any(axis=1), jnp.argmax(ov, axis=1), 0).astype(jnp.int32)

    w_row = jnp.asarray(weight).reshape(1, D).astype(x.dtype)
    b_2d = jnp.asarray(bias).reshape(1, 1).astype(jnp.float32)

    # Data-dependent block index: overlapping steps fetch their own node tile;
    # skipped steps re-point at the graph tile's first needed block => no new DMA.
    def _node_block(b, n, tmin, tmax, ftile):
        lo = b * tile_b
        hit = jnp.logical_and(tmin[n] < lo + tile_b, tmax[n] >= lo).astype(jnp.int32)
        return hit * n + (1 - hit) * ftile[b]

    def n2g_map(b, n, tmin, tmax, ftile):
        return (_node_block(b, n, tmin, tmax, ftile), 0, 0)

    def x_map(b, n, tmin, tmax, ftile):
        return (_node_block(b, n, tmin, tmax, ftile), 0)

    def w_map(b, n, tmin, tmax, ftile):
        return (0, 0)

    def out_map(b, n, tmin, tmax, ftile):
        return (b, 0)

    kernel = functools.partial(_attention_readout_kernel,
                               n_nodes=N, ragged_last=(N % tile_n != 0))

    # Advisory cost hint (upper bound: ignores prefetch-gated tile skips).
    flops = int(num_bt * num_nt * (2 * tile_b * tile_n * D + 2 * tile_n * D))
    transcendentals = int(num_bt * num_nt * tile_b * (tile_n + 2))
    bytes_accessed = int(num_bt * num_nt * tile_n * (D * x_itemsize + 4)
                         + b_pad * D * x_itemsize)

    out = pl.pallas_call(
        kernel,
        out_shape=jax.ShapeDtypeStruct((b_pad, D), x.dtype),
        grid_spec=pltpu.PrefetchScalarGridSpec(
            num_scalar_prefetch=3,
            grid=(num_bt, num_nt),              # (parallel graph tiles, node tiles)
            in_specs=[
                pl.BlockSpec((1, 1, tile_n), n2g_map),              # node2graph rows
                pl.BlockSpec((tile_n, D), x_map),                   # x tile (native dtype)
                pl.BlockSpec((1, D), w_map),                        # linear weight row
                pl.BlockSpec(memory_space=pltpu.MemorySpace.SMEM),  # bias (1, 1)
            ],
            out_specs=pl.BlockSpec((tile_b, D), out_map),
            scratch_shapes=[
                pltpu.VMEM((tile_b, 1), jnp.float32),   # running per-graph max
                pltpu.VMEM((tile_b, 1), jnp.float32),   # running per-graph sum
                pltpu.VMEM((tile_b, D), jnp.float32),   # unnormalized output accumulator
            ],
        ),
        compiler_params=pltpu.CompilerParams(
            dimension_semantics=("parallel", "arbitrary"),
            vmem_limit_bytes=vmem_limit,
        ),
        cost_estimate=pl.CostEstimate(flops=flops,
                                      transcendentals=transcendentals,
                                      bytes_accessed=bytes_accessed),
    )(tile_min, tile_max, first_tile, n2g_tiles, x, w_row, b_2d)

    return out[:batch_size, :]


def _reference(x, node2graph, weight, bias, batch_size):
    """Pure-JAX reference (scatter_softmax + scatter_add)."""
    s = (x.astype(jnp.float32) @ weight.astype(jnp.float32).T
         + bias.astype(jnp.float32))[:, 0]
    m = jax.ops.segment_max(s, node2graph, num_segments=batch_size)
    e = jnp.exp(s - m[node2graph])
    z = jax.ops.segment_sum(e, node2graph, num_segments=batch_size)
    attn = e / z[node2graph]
    return jax.ops.segment_sum(attn[:, None] * x.astype(jnp.float32),
                               node2graph, num_segments=batch_size)


if __name__ == "__main__":
    key = jax.random.PRNGKey(0)
    k_x1, k_x2, k_x3, k_w, k_b = jax.random.split(key, 5)

    input_dim = 32
    bound = 1.0 / jnp.sqrt(jnp.float32(input_dim))
    weight = jax.random.uniform(k_w, (1, input_dim), jnp.float32, -bound, bound)
    bias = jax.random.uniform(k_b, (1,), jnp.float32, -bound, bound)

    def run_case(kx, sizes, tile_n, tile_b=None):
        ids = []
        for g, s in enumerate(sizes):
            ids.extend([g] * s)                       # sorted node2graph, no empty graphs
        node2graph = jnp.asarray(ids, dtype=jnp.int32)
        n = len(ids)
        bsz = len(sizes)
        xx = jax.random.normal(kx, (n, input_dim), dtype=jnp.float32)
        out = attention_readout(xx, node2graph, weight, bias, bsz,
                                tile_n=tile_n, tile_b=tile_b)
        out = jax.block_until_ready(out)
        ref = _reference(xx, node2graph, weight, bias, bsz)
        assert out.shape == (bsz, input_dim)
        assert jnp.allclose(out, ref, rtol=1e-4, atol=1e-5), "mismatch vs reference"

    # Case 1: graph spanning a node-tile boundary -> online cross-tile rescale.
    run_case(k_x1, [4, 3, 5, 4], tile_n=8)
    # Case 2: ragged last node tile (N = 13 not a multiple of tile_n).
    run_case(k_x2, [5, 4, 4], tile_n=8)
    # Case 3: two graph row-tiles -> exercises the prefetch-gated tile skip and the
    #         data-dependent index_map.
    run_case(k_x3, [4, 3, 5, 2, 4, 3, 3, 4, 2, 4, 3, 3], tile_n=8, tile_b=8)

    print("KERNEL_OK")
</pallas_src>

<mosaic_0001>
module attributes {stable_mosaic.version = 11 : i64} {
  func.func @_attention_readout_kernel(%arg0: i32, %arg1: i32, %arg2: memref<2xi32, #tpu.memory_space<smem>>, %arg3: memref<2xi32, #tpu.memory_space<smem>>, %arg4: memref<1xi32, #tpu.memory_space<smem>>, %arg5: memref<1x1x8xi32, #tpu.memory_space<vmem>>, %arg6: memref<8x32xf32, #tpu.memory_space<vmem>>, %arg7: memref<1x32xf32, #tpu.memory_space<vmem>>, %arg8: memref<1x1xf32, #tpu.memory_space<smem>>, %arg9: memref<8x32xf32, #tpu.memory_space<vmem>>, %arg10: memref<8x1xf32, #tpu.memory_space<vmem>>, %arg11: memref<8x1xf32, #tpu.memory_space<vmem>>, %arg12: memref<8x32xf32, #tpu.memory_space<vmem>>) attributes {dimension_semantics = [#tpu.dimension_semantics<parallel>, #tpu.dimension_semantics<arbitrary>], iteration_bounds = array<i64: 1, 2>, scalar_prefetch = 3 : i64, scratch_operands = 3 : i64, tpu.core_type = #tpu.core_type<tc>, window_params = [{transform_indices = @transform_0, window_bounds = array<i64: 1, 1, 8>}, {transform_indices = @transform_1, window_bounds = array<i64: 8, 32>}, {pipeline_mode = #tpu.pipeline_mode<synchronous>, transform_indices = @transform_2, window_bounds = array<i64: 1, 32>}, {transform_indices = @transform_3, window_bounds = array<i64: 1, 1>}, {transform_indices = @transform_4, window_bounds = array<i64: 8, 32>}]} {
    %c0_i32 = arith.constant 0 : i32
    %0 = arith.cmpi eq, %arg1, %c0_i32 : i32
    %1 = arith.extui %0 : i1 to i32
    %c0_i32_0 = arith.constant 0 : i32
    %2 = arith.cmpi ne, %1, %c0_i32_0 : i32
    scf.if %2 {
      %cst = arith.constant -1.000000e+30 : f32
      %17 = vector.broadcast %cst : f32 to vector<8x1xf32>
      %c0 = arith.constant 0 : index
      %c0_4 = arith.constant 0 : index
      %18 = vector.load %arg10[%c0, %c0_4] : memref<8x1xf32, #tpu.memory_space<vmem>>, vector<8x1xf32>
      tpu.vector_store %arg10[%c0, %c0_4], %17 {strides = array<i32>} : memref<8x1xf32, #tpu.memory_space<vmem>>, vector<8x1xf32>,
      %cst_5 = arith.constant 0.000000e+00 : f32
      %19 = vector.broadcast %cst_5 : f32 to vector<8x1xf32>
      %c0_6 = arith.constant 0 : index
      %c0_7 = arith.constant 0 : index
      %20 = vector.load %arg11[%c0_6, %c0_7] : memref<8x1xf32, #tpu.memory_space<vmem>>, vector<8x1xf32>
      tpu.vector_store %arg11[%c0_6, %c0_7], %19 {strides = array<i32>} : memref<8x1xf32, #tpu.memory_space<vmem>>, vector<8x1xf32>,
      %cst_8 = arith.constant 0.000000e+00 : f32
      %21 = vector.broadcast %cst_8 : f32 to vector<8x32xf32>
      %c0_9 = arith.constant 0 : index
      %c0_10 = arith.constant 0 : index
      %22 = vector.load %arg12[%c0_9, %c0_10] : memref<8x32xf32, #tpu.memory_space<vmem>>, vector<8x32xf32>
      tpu.vector_store %arg12[%c0_9, %c0_10], %21 {strides = array<i32>} : memref<8x32xf32, #tpu.memory_space<vmem>>, vector<8x32xf32>,
    } else {
    }
    %c8_i32 = arith.constant 8 : i32
    %3 = arith.muli %arg0, %c8_i32 : i32
    %4 = arith.index_cast %arg1 : i32 to index
    %5 = memref.load %arg2[%4] : memref<2xi32, #tpu.memory_space<smem>>
    %c8_i32_1 = arith.constant 8 : i32
    %6 = arith.addi %3, %c8_i32_1 : i32
    %7 = arith.cmpi slt, %5, %6 : i32
    %8 = arith.index_cast %arg1 : i32 to index
    %9 = memref.load %arg3[%8] : memref<2xi32, #tpu.memory_space<smem>>
    %10 = arith.cmpi sge, %9, %3 : i32
    %11 = arith.andi %7, %10 : i1
    %12 = arith.extui %11 : i1 to i32
    %c0_i32_2 = arith.constant 0 : i32
    %13 = arith.cmpi ne, %12, %c0_i32_2 : i32
    scf.if %13 {
      %c0 = arith.constant 0 : index
      %c0_4 = arith.constant 0 : index
      %17 = vector.load %arg6[%c0, %c0_4] : memref<8x32xf32, #tpu.memory_space<vmem>>, vector<8x32xf32>
      %c0_5 = arith.constant 0 : index
      %c0_6 = arith.constant 0 : index
      %c0_7 = arith.constant 0 : index
      %18 = vector.load %arg5[%c0_5, %c0_6, %c0_7] : memref<1x1x8xi32, #tpu.memory_space<vmem>>, vector<1x1x8xi32>
      %19 = vector.shape_cast %18 : vector<1x1x8xi32> to vector<1x8xi32>
      %c0_8 = arith.constant 0 : index
      %c0_9 = arith.constant 0 : index
      %20 = vector.load %arg7[%c0_8, %c0_9] : memref<1x32xf32, #tpu.memory_space<vmem>>, vector<1x32xf32>
      %cst = arith.constant dense<0.000000e+00> : vector<1x8xf32>
      %21 = tpu.matmul %20, %17, %cst {dimension_numbers = #tpu.dot_dimension_numbers<[1], [1], [0], [0], [0, 0, 1, 0], [], []>} : vector<1x32xf32>, vector<8x32xf32>, vector<1x8xf32> -> vector<1x8xf32>
      %c0_10 = arith.constant 0 : index
      %c0_11 = arith.constant 0 : index
      %22 = memref.load %arg8[%c0_10, %c0_11] : memref<1x1xf32, #tpu.memory_space<smem>>
      %23 = vector.broadcast %22 : f32 to vector<1x8xf32>
      %24 = arith.addf %21, %23 : vector<1x8xf32>
      %25 = tpu.iota {dimensions = array<i32: 0>} : vector<8x8xi32>
      %26 = vector.broadcast %3 : i32 to vector<8x8xi32>
      %27 = arith.addi %26, %25 : vector<8x8xi32>
      %28 = vector.broadcast %19 : vector<1x8xi32> to vector<8x8xi32>
      %29 = arith.cmpi eq, %28, %27 : vector<8x8xi32>
      %cst_12 = arith.constant -1.000000e+30 : f32
      %30 = vector.shape_cast %24 : vector<1x8xf32> to vector<1x8xf32>
      %31 = vector.broadcast %30 : vector<1x8xf32> to vector<8x8xf32>
      %32 = vector.broadcast %cst_12 : f32 to vector<8x8xf32>
      %33 = arith.select %29, %31, %32 : vector<8x8xi1>, vector<8x8xf32>
      %c0_13 = arith.constant 0 : index
      %c0_14 = arith.constant 0 : index
      %34 = vector.load %arg10[%c0_13, %c0_14] : memref<8x1xf32, #tpu.memory_space<vmem>>, vector<8x1xf32>
      %cst_15 = arith.constant dense<0xFF800000> : vector<8xf32>
      %35 = vector.multi_reduction <maximumf>, %33, %cst_15 [1] : vector<8x8xf32> to vector<8xf32>
      %36 = vector.shape_cast %35 : vector<8xf32> to vector<8x1xf32>
      %37 = arith.maximumf %34, %36 : vector<8x1xf32>
      %38 = arith.subf %34, %37 : vector<8x1xf32>
      %39 = math.exp %38 : vector<8x1xf32>
      %40 = vector.broadcast %37 : vector<8x1xf32> to vector<8x8xf32>
      %41 = arith.subf %33, %40 : vector<8x8xf32>
      %42 = math.exp %41 : vector<8x8xf32>
      %cst_16 = arith.constant 0.000000e+00 : f32
      %43 = vector.broadcast %cst_16 : f32 to vector<8x8xf32>
      %44 = arith.select %29, %42, %43 : vector<8x8xi1>, vector<8x8xf32>
      %c0_17 = arith.constant 0 : index
      %c0_18 = arith.constant 0 : index
      %45 = vector.load %arg11[%c0_17, %c0_18] : memref<8x1xf32, #tpu.memory_space<vmem>>, vector<8x1xf32>
      %46 = arith.mulf %39, %45 : vector<8x1xf32>
      %cst_19 = arith.constant dense<0.000000e+00> : vector<8xf32>
      %47 = vector.multi_reduction <add>, %44, %cst_19 [1] : vector<8x8xf32> to vector<8xf32>
      %48 = vector.shape_cast %47 : vector<8xf32> to vector<8x1xf32>
      %49 = arith.addf %46, %48 : vector<8x1xf32>
      %c0_20 = arith.constant 0 : index
      %c0_21 = arith.constant 0 : index
      %50 = vector.load %arg11[%c0_20, %c0_21] : memref<8x1xf32, #tpu.memory_space<vmem>>, vector<8x1xf32>
      tpu.vector_store %arg11[%c0_20, %c0_21], %49 {strides = array<i32>} : memref<8x1xf32, #tpu.memory_space<vmem>>, vector<8x1xf32>,
      %c0_22 = arith.constant 0 : index
      %c0_23 = arith.constant 0 : index
      %51 = vector.load %arg10[%c0_22, %c0_23] : memref<8x1xf32, #tpu.memory_space<vmem>>, vector<8x1xf32>
      tpu.vector_store %arg10[%c0_22, %c0_23], %37 {strides = array<i32>} : memref<8x1xf32, #tpu.memory_space<vmem>>, vector<8x1xf32>,
      %cst_24 = arith.constant dense<0.000000e+00> : vector<8x32xf32>
      %52 = tpu.matmul %44, %17, %cst_24 {dimension_numbers = #tpu.dot_dimension_numbers<[1], [0], [0], [1], [0, 0, 1, 1], [], []>} : vector<8x8xf32>, vector<8x32xf32>, vector<8x32xf32> -> vector<8x32xf32>
      %c0_25 = arith.constant 0 : index
      %c0_26 = arith.constant 0 : index
      %53 = vector.load %arg12[%c0_25, %c0_26] : memref<8x32xf32, #tpu.memory_space<vmem>>, vector<8x32xf32>
      %54 = vector.broadcast %39 : vector<8x1xf32> to vector<8x32xf32>
      %55 = arith.mulf %54, %53 : vector<8x32xf32>
      %56 = arith.addf %55, %52 : vector<8x32xf32>
      %c0_27 = arith.constant 0 : index
      %c0_28 = arith.constant 0 : index
      %57 = vector.load %arg12[%c0_27, %c0_28] : memref<8x32xf32, #tpu.memory_space<vmem>>, vector<8x32xf32>
      tpu.vector_store %arg12[%c0_27, %c0_28], %56 {strides = array<i32>} : memref<8x32xf32, #tpu.memory_space<vmem>>, vector<8x32xf32>,
    } else {
    }
    %c1_i32 = arith.constant 1 : i32
    %14 = arith.cmpi eq, %arg1, %c1_i32 : i32
    %15 = arith.extui %14 : i1 to i32
    %c0_i32_3 = arith.constant 0 : i32
    %16 = arith.cmpi ne, %15, %c0_i32_3 : i32
    scf.if %16 {
      %c0 = arith.constant 0 : index
      %c0_4 = arith.constant 0 : index
      %17 = vector.load %arg11[%c0, %c0_4] : memref<8x1xf32, #tpu.memory_space<vmem>>, vector<8x1xf32>
      %cst = arith.constant 0.000000e+00 : f32
      %18 = vector.broadcast %cst : f32 to vector<8x1xf32>
      %19 = arith.cmpf ogt, %17, %18 : vector<8x1xf32>
      %cst_5 = arith.constant 1.000000e+00 : f32
      %20 = vector.broadcast %cst_5 : f32 to vector<8x1xf32>
      %21 = arith.select %19, %17, %20 : vector<8x1xi1>, vector<8x1xf32>
      %c0_6 = arith.constant 0 : index
      %c0_7 = arith.constant 0 : index
      %22 = vector.load %arg12[%c0_6, %c0_7] : memref<8x32xf32, #tpu.memory_space<vmem>>, vector<8x32xf32>
      %23 = tpu.reciprocal %21 : vector<8x1xf32> -> vector<8x1xf32>
      %24 = vector.broadcast %23 : vector<8x1xf32> to vector<8x32xf32>
      %25 = arith.mulf %22, %24 : vector<8x32xf32>
      %c0_8 = arith.constant 0 : index
      %c0_9 = arith.constant 0 : index
      %26 = vector.load %arg9[%c0_8, %c0_9] : memref<8x32xf32, #tpu.memory_space<vmem>>, vector<8x32xf32>
      tpu.vector_store %arg9[%c0_8, %c0_9], %25 {strides = array<i32>} : memref<8x32xf32, #tpu.memory_space<vmem>>, vector<8x32xf32>,
    } else {
    }
    return
  }
  func.func @transform_0(%arg0: i32, %arg1: i32, %arg2: memref<2xi32, #tpu.memory_space<smem>>, %arg3: memref<2xi32, #tpu.memory_space<smem>>, %arg4: memref<1xi32, #tpu.memory_space<smem>>) -> (i32, i32, i32) {
    %c8_i32 = arith.constant 8 : i32
    %0 = arith.muli %arg0, %c8_i32 : i32
    %1 = arith.index_cast %arg1 : i32 to index
    %2 = memref.load %arg2[%1] : memref<2xi32, #tpu.memory_space<smem>>
    %c8_i32_0 = arith.constant 8 : i32
    %3 = arith.addi %0, %c8_i32_0 : i32
    %4 = arith.cmpi slt, %2, %3 : i32
    %5 = arith.index_cast %arg1 : i32 to index
    %6 = memref.load %arg3[%5] : memref<2xi32, #tpu.memory_space<smem>>
    %7 = arith.cmpi sge, %6, %0 : i32
    %8 = arith.andi %4, %7 : i1
    %9 = arith.extui %8 : i1 to i32
    %10 = arith.muli %9, %arg1 : i32
    %c1_i32 = arith.constant 1 : i32
    %11 = arith.subi %c1_i32, %9 : i32
    %12 = arith.index_cast %arg0 : i32 to index
    %13 = memref.load %arg4[%12] : memref<1xi32, #tpu.memory_space<smem>>
    %14 = arith.muli %11, %13 : i32
    %15 = arith.addi %10, %14 : i32
    %c0_i32 = arith.constant 0 : i32
    %c0_i32_1 = arith.constant 0 : i32
    %c0_i32_2 = arith.constant 0 : i32
    return %15, %c0_i32, %c0_i32_1 : i32, i32, i32
  }
  func.func @transform_1(%arg0: i32, %arg1: i32, %arg2: memref<2xi32, #tpu.memory_space<smem>>, %arg3: memref<2xi32, #tpu.memory_space<smem>>, %arg4: memref<1xi32, #tpu.memory_space<smem>>) -> (i32, i32) {
    %c8_i32 = arith.constant 8 : i32
    %0 = arith.muli %arg0, %c8_i32 : i32
    %1 = arith.index_cast %arg1 : i32 to index
    %2 = memref.load %arg2[%1] : memref<2xi32, #tpu.memory_space<smem>>
    %c8_i32_0 = arith.constant 8 : i32
    %3 = arith.addi %0, %c8_i32_0 : i32
    %4 = arith.cmpi slt, %2, %3 : i32
    %5 = arith.index_cast %arg1 : i32 to index
    %6 = memref.load %arg3[%5] : memref<2xi32, #tpu.memory_space<smem>>
    %7 = arith.cmpi sge, %6, %0 : i32
    %8 = arith.andi %4, %7 : i1
    %9 = arith.extui %8 : i1 to i32
    %10 = arith.muli %9, %arg1 : i32
    %c1_i32 = arith.constant 1 : i32
    %11 = arith.subi %c1_i32, %9 : i32
    %12 = arith.index_cast %arg0 : i32 to index
    %13 = memref.load %arg4[%12] : memref<1xi32, #tpu.memory_space<smem>>
    %14 = arith.muli %11, %13 : i32
    %15 = arith.addi %10, %14 : i32
    %c0_i32 = arith.constant 0 : i32
    %c0_i32_1 = arith.constant 0 : i32
    return %15, %c0_i32 : i32, i32
  }
  func.func @transform_2(%arg0: i32, %arg1: i32, %arg2: memref<2xi32, #tpu.memory_space<smem>>, %arg3: memref<2xi32, #tpu.memory_space<smem>>, %arg4: memref<1xi32, #tpu.memory_space<smem>>) -> (i32, i32) {
    %c0_i32 = arith.constant 0 : i32
    %c0_i32_0 = arith.constant 0 : i32
    %c0_i32_1 = arith.constant 0 : i32
    return %c0_i32, %c0_i32_0 : i32, i32
  }
  func.func @transform_3(%arg0: i32, %arg1: i32, %arg2: memref<2xi32, #tpu.memory_space<smem>>, %arg3: memref<2xi32, #tpu.memory_space<smem>>, %arg4: memref<1xi32, #tpu.memory_space<smem>>) -> (i32, i32) {
    %c0_i32 = arith.constant 0 : i32
    %c0_i32_0 = arith.constant 0 : i32
    %c0_i32_1 = arith.constant 0 : i32
    return %c0_i32, %c0_i32_0 : i32, i32
  }
  func.func @transform_4(%arg0: i32, %arg1: i32, %arg2: memref<2xi32, #tpu.memory_space<smem>>, %arg3: memref<2xi32, #tpu.memory_space<smem>>, %arg4: memref<1xi32, #tpu.memory_space<smem>>) -> (i32, i32) {
    %c0_i32 = arith.constant 0 : i32
    %c0_i32_0 = arith.constant 0 : i32
    return %arg0, %c0_i32 : i32, i32
  }
}

</mosaic_0001>

<bundles_post_ra>
// kernel: tpu_custom_call.1
= control target key start
LH: loop header
LB: loop body
LE: loop exit
PB: predicated region body
PF: predicated region fallthrough
CT: control target
= control target key end

     0   :  { %s1061_s0 = inlined_call_operand.hbm [shape: s32[2], index: 0, kind: input, shape index: {}]   ;;  %s1062_s2 = inlined_call_operand.<no memory space> [shape: s32[1], index: 2, kind: input, shape index: {}]   ;;  %s1063_s3 = inlined_call_operand.vmem [shape: s32[2,1,8], index: 3, kind: input, shape index: {}]   ;;  %s1064_s4 = inlined_call_operand.vmem [shape: f32[16,32], index: 4, kind: input, shape index: {}]   ;;  %s1065_s5 = inlined_call_operand.vmem [shape: f32[1,32], index: 5, kind: input, shape index: {}]   ;;  %s1066_s7 = inlined_call_operand.hbm [shape: f32[8,32], index: 7, kind: output, shape index: {}]   ;;  %s1067_s1 = inlined_call_operand.hbm [shape: s32[2], index: 1, kind: input, shape index: {}]   ;;  %s1068_s6 = inlined_call_operand.<no memory space> [shape: f32[1,1], index: 6, kind: input, shape index: {}]  }
   0x1   :  { %s811_s26 = scalar_lea.hbm %s1061_s0, 16 }
   0x2   :  { %p812_p0 = scmp.ne.s32.totalorder %s1061_s0, %s811_s26  ;;  %p815_p1 = scmp.lt.u32.totalorder %s811_s26, %s1061_s0 }
   0x4   :  { %p817_p2 = pnand %p815_p1, %p812_p0 }
   0x6   :  { %820 = shalt.err (!%p817_p2)  }
   0x7   :  { %s887_s8 = smov [#allocation6]   ;;  %s821_s13 = scalar_lea.hbm %s1067_s1, 16 }
   0x8   :  { %13 = dma.hbm_to_smem %s1061_s0, 16, %s887_s8, [#allocation5] }
   0x9   :  { %p822_p3 = scmp.ne.s32.totalorder %s1067_s1, %s821_s13  ;;  %p825_p4 = scmp.lt.u32.totalorder %s821_s13, %s1067_s1 }
   0xb   :  { %p827_p5 = pnand %p825_p4, %p822_p3 }
   0xd   :  { %830 = shalt.err (!%p827_p5)  }
   0xe   :  { %s888_s18 = smov [#allocation7]   ;;  %16 = sst [smem:[#allocation8]] %s1062_s2 }
   0xf   :  { %15 = dma.hbm_to_smem %s1067_s1, 16, %s888_s18, [#allocation5] }
  0x10   :  { %17 = sst [smem:[#allocation9]] %s1068_s6 }
  0x11   :  { %869 = dma.done.wait [#allocation5], 32 }
  0x12   :  { %870 = vsyncadd [#allocation5], 4294967264 }
  0x13   :  { %19 = sfence }
  0x14   :  { %20 = vsyncpa [#allocation11], 0  ;;  %s966_s24 = smov 0   ;;  %s968_s25 = smov 0  }
  0x15   :  { %s970_s26 = smov 0  }
  0x16 LB: > { %s728_s1 = sadd.s32 4294967295, %s885_s26   ;;  %s35_s2 = sadd.s32 1, %s881_s25  ;;  %s885_s26 = sphi %s970_s26, %s26_s26   ;;  %s881_s25 = sphi %s968_s25, %s1071_s25   ;;  %s877_s24 = sphi %s966_s24, %s1070_s24  }
  0x17   : > { %p36_p6 = scmp.ge.s32.totalorder %s35_s2, 2  ;;  %p735_p7 = scmp.ge.s32.totalorder %s885_s26, 1 }
  0x18   : > { %p305_p8 = scmp.lt.s32.totalorder %s885_s26, 3 }
  0x19   : > { %s1073_s2 = smov (%p36_p6, %s35_s2), 0 }
  0x1a   : > { %p306_p9 = pnand %p735_p7, %p305_p8 }
  0x1b   : > { %s357_s6 = sld [smem:[#allocation6 + %s877_s24]] (!%p306_p9)  ;;  %p739_p4 = scmp.ne.s32.totalorder (!%p306_p9), %s877_s24, 0 }
  0x1c   : > { %309 = sbr.rel (%p306_p9) target bundleno = 961 (0x3c1), region = 36  ;;  %s360_s27 = sld [smem:[#allocation7 + %s877_s24]] (!%p306_p9) }
  0x1d   : > { %s388_s28 = sld [smem:[#allocation6 + %s877_s24]] (!%p306_p9) }
  0x1e   : > { %s391_s29 = sld [smem:[#allocation7 + %s877_s24]] (!%p306_p9) }
  0x1f   : > { %s367_s30 = sld [smem:[#allocation8]] (!%p306_p9) }
  0x21   : > { %p359_p10 = scmp.lt.s32.totalorder (!%p306_p9), %s357_s6, 8 }
  0x22   : > { %p361_p11 = scmp.ge.s32.totalorder (!%p306_p9), %s360_s27, 0 }
  0x23   : > { %p390_p12 = scmp.lt.s32.totalorder %s388_s28, 8  ;;  %vm423_vm0 = vcmask (!%p739_p4), 7168   ;;  %vm426_vm1 = vcmask (!%p739_p4), 261120   ;;  %v889_v0 = vmov (!%p739_p4), -1e+30   ;;  %v890_v1 = vmov (!%p739_p4), 0.0  }
  0x24   : > { %p362_p13 = pnand %p361_p11, %p359_p10  ;;  %p392_p0 = scmp.ge.s32.totalorder %s391_s29, 0  ;;  %424 = vst.msk [vmem:[#allocation2] sm:$0xff] (!%p739_p4), %vm423_vm0, %v889_v0  ;;  %425 = vst.msk [vmem:[#allocation3] sm:$0xff] (!%p739_p4), %vm423_vm0, %v890_v1 }
  0x25   : > { %427 = vst.msk [vmem:[#allocation4] sm:$0xff] (!%p739_p4), %vm426_vm1, %v890_v1 }
  0x26   : > { %s736_s8 = scalar_select %p362_p13, 0, 1 }
  0x27   : > { %p393_p1 = pnand %p392_p0, %p390_p12 }
  0x28   : > { %s365_s9 = smul.u32 %s877_s24, %s736_s8  ;;  %s366_s10 = ssub.s32 1, %s736_s8 }
  0x29   : > { %s368_s11 = smul.u32 %s367_s30, %s366_s10 }
  0x2a   : > { %s737_s12 = scalar_select %p393_p1, 0, 1 }
  0x2b   : > { %s369_s13 = sadd.s32 %s368_s11, %s365_s9 }
  0x2c   : > { %p370_p2 = scmp.lt.s32.totalorder %s369_s13, 1  ;;  %s396_s14 = smul.u32 %s877_s24, %s737_s12 }
  0x2d   : > { %s397_s15 = ssub.s32 1, %s737_s12 }
  0x2e   : > { %s1075_s13 = smov (!%p370_p2, %s369_s13), 1  ;;  %s399_s16 = smul.u32 %s397_s15, %s367_s30 }
  0x2f   : > { %s372_s19 = scalar_lea.vmem %s1063_s3, %s1075_s13  ;;  %422 = sbr.rel (%p739_p4) target bundleno = 54 (0x36), region = 40 }
  0x30   : > { %s400_s20 = sadd.s32 %s399_s16, %s396_s14 }
  0x31   : > { %p401_p3 = scmp.lt.s32.totalorder %s400_s20, 1 }
  0x33   : > { %s1077_s20 = smov (!%p401_p3, %s400_s20), 1 }
  0x34   : > { %s738_s0 = sshll.u32 %s1077_s20, 3 }
  0x35   : > { %s404_s23 = scalar_lea.vmem %s1064_s4, %s738_s0 }
  0x36 PF: > { %s429_s6 = sld [smem:[#allocation6 + %s877_s24]] }
  0x37   : > { %s432_s27 = sld [smem:[#allocation7 + %s877_s24]] }
  0x3c   : > { %p431_p5 = scmp.lt.s32.totalorder %s429_s6, 8 }
  0x3d   : > { %p433_p6 = scmp.ge.s32.totalorder %s432_s27, 0 }
  0x3f   : > { %p434_p7 = pnand %p433_p6, %p431_p5 }
  0x40   : > { %v438_v2 = vld [vmem:[%s404_s23] sm:$0xff] (!%p434_p7)  ;;  %vm443_vm2 = vcmask (!%p434_p7), 261120   ;;  %v891_v3 = vmov (!%p434_p7), 0.0   ;;  %vm892_vm3 = vmmov (!%p434_p7), 0   ;;  %s441_s30 = sld [smem:[#allocation9]] (!%p434_p7)  ;;  %v520_v5 = vlaneseq (!%p434_p7)  ;;  %v552_v29 = vld [vmem:[#allocation3] sm:$0xff] (!%p434_p7) }
  0x41   : > { %437 = sbr.rel (%p434_p7) target bundleno = 790 (0x316), region = 44  ;;  %753 = vmatprep.subr.mxu0 (!%p434_p7), %v891_v3  ;;  %755 = vmatprep.mubr.msk.f32.mxu0 (!%p434_p7), %vm892_vm3, %v891_v3  ;;  %v440_v4 = vld [vmem:[%s1065_s5] sm:$0x1] (!%p434_p7)  ;;  %vm535_vm5 = vcmask (!%p434_p7), 64512   ;;  %v893_v16 = vmov (!%p434_p7), 0   ;;  %vm558_vm6 = vcmask (!%p434_p7), 7168  }
  0x42   : > { %754 = vmatpush3.xpose.msk.msra.mxu0 (!%p434_p7), %vm443_vm2, %v438_v2  ;;  %758 = vmatprep.subr.mxu1 (!%p434_p7), %v891_v3  ;;  %v521_v6 = vshrl.u32 (!%p434_p7), %v520_v5, 7  ;;  %v742_v9 = vld [vmem:[%s372_s19] ss:$0 sm:$0xff] (!%p434_p7)  ;;  %v634_v33 = vld [vmem:[#allocation4] sm:$0xff] (!%p434_p7) }
  0x43   : > { %759 = vmatpush3.msra.mxu1 (!%p434_p7), %v438_v2  ;;  %760 = vmatprep.mubr.msk.f32.mxu1 (!%p434_p7), %vm892_vm3, %v891_v3  ;;  %v534_v17 = vld [vmem:[#allocation2] sm:$0xff] (!%p434_p7) }
  0x44   : > { %v531_v8 = vsub.s32 (!%p434_p7), 0, %v521_v6  ;;  %vm528_vm4 = vcmp.eq.s32.totalorder (!%p434_p7), %v742_v9, %v521_v6  ;;  %802 = vset.pattern.permute.xlu0 (!%p434_p7), %v893_v16  ;;  %803 = vset.pattern.permute.xlu1 (!%p434_p7), %v893_v16 }
  0x45   : > { %756 = vmatmul.mubr.msk.f32.vlgmr.msra.gmra.mrb[0].mxu0 (!%p434_p7), %vm443_vm2, %v440_v4 }
  0x46   : > { %v442_v7 = vstv (!%p434_p7), %s441_s30 }
 0x118   : > { %v516_v10 = vpop.f32.mrb[0].mxu0 }
 0x119   : > { %v517_v11 = vadd.f32 %v516_v10, %v442_v7  ;;  %v757_v12 = vpop.f32.mrb[1].mxu0 }
 0x11b   : > { %v532_v13 = vrot.slane %v517_v11, %v531_v8 }
 0x11d   : > { %v533_v14 = vsel %vm528_vm4, %v532_v13, -1e+30 }
 0x11e   : > { %v536_v15 = vsel %vm535_vm5, %v533_v14, -inf }
 0x11f   : > { %537 = vmax.xlane.f32.xlu0 %v536_v15 }
 0x1ac   : > { %v538_v18 = vpop.xlane.xlu0 %537 }
 0x1ad   : > { %v539_v19 = vmax.f32 %v534_v17, %v538_v18 }
 0x1af   : > { %v540_v20 = vsub.f32 %v534_v17, %v539_v19  ;;  %560 = vst.msk [vmem:[#allocation2] sm:$0xff] %vm558_vm6, %v539_v19  ;;  %545 = vperm.xlu0 %802, %v539_v19  }
 0x1b1   : > { %v541_v27 = vmul.f32 1.442695, %v540_v20 }
 0x22e   : > { %v546_v21 = vpop.permute.xlu0 %545 }
 0x22f   : > { %v548_v22 = vsub.f32 %v533_v14, %v546_v21 }
 0x231   : > { %v549_v23 = vmul.f32 1.442695, %v548_v22 }
 0x233   : > { %804 = vpow2.f32 %v549_v23 }
 0x234   : > { %806 = vpow2.f32 %v541_v27 }
 0x23d   : > { %v805_v24 = vpop.eup %804 }
 0x23e   : > { %v551_v25 = vsel %vm528_vm4, %v805_v24, 0.0  ;;  %v807_v28 = vpop.eup %806 }
 0x23f   : > { %761 = vmatmul.mubr.msk.f32.vlgmr.msra.gmra.mrb[0].mxu1 %vm535_vm5, %v551_v25  ;;  %v554_v26 = vsel %vm535_vm5, %v551_v25, 0.0  ;;  %v553_v30 = vmul.f32 %v807_v28, %v552_v29 }
 0x240   : > { %555 = vadd.xlane.f32.xlu1 %v554_v26 }
 0x251   : > { %637 = vperm.xlu1 %803, %v807_v28  }
 0x2cd   : > { %v556_v31 = vpop.xlane.xlu1 %555 }
 0x2ce   : > { %v557_v32 = vadd.f32 %v556_v31, %v553_v30 }
 0x2d0   : > { %559 = vst.msk [vmem:[#allocation3] sm:$0xff] %vm558_vm6, %v557_v32 }
 0x2d1   : > { %v638_v34 = vpop.permute.xlu1 %637 }
 0x2d2   : > { %v640_v35 = vmul.f32 %v638_v34, %v634_v33 }
 0x312   : > { %v630_v36 = vpop.f32.mrb[0].mxu1 }
 0x313   : > { %v641_v37 = vadd.f32 %v640_v35, %v630_v36  ;;  %v762_v38 = vpop.f32.mrb[1].mxu1 }
 0x315   : > { %642 = vst.msk [vmem:[#allocation4] sm:$0xff] %vm443_vm2, %v641_v37 }
 0x316 PF: > { %p744_p8 = scmp.ne.s32.totalorder %s877_s24, 1 }
 0x317   : > { %v647_v39 = vld [vmem:[#allocation3] sm:$0xff] (!%p744_p8)  ;;  %v894_v40 = vmov (!%p744_p8), 0   ;;  %vm658_vm8 = vcmask (!%p744_p8), 261120  }
 0x318   : > { %646 = sbr.rel (%p744_p8) target bundleno = 936 (0x3a8), region = 48  ;;  %808 = vset.pattern.permute.xlu0 (!%p744_p8), %v894_v40  ;;  %vm648_vm7 = vcmp.gt.f32.partialorder (!%p744_p8), %v647_v39, 0.0 }
 0x319   : > { %v649_v41 = vsel (!%p744_p8), %vm648_vm7, %v647_v39, 1.0 }
 0x31a   : > { %809 = vrcp.f32 (!%p744_p8), %v649_v41 }
 0x31c   : > { %v650_v43 = vld [vmem:[#allocation4] sm:$0xff] (!%p744_p8) }
 0x324   : > { %v810_v42 = vpop.eup %809 }
 0x325   : > { %654 = vperm.xlu0 %808, %v810_v42  }
 0x3a4   : > { %v655_v44 = vpop.permute.xlu0 %654 }
 0x3a5   : > { %v657_v45 = vmul.f32 %v655_v44, %v650_v43 }
 0x3a7   : > { %659 = vst.msk [vmem:[#allocation10] sm:$0xff] %vm658_vm8, %v657_v45 }
 0x3a8 PF: > { %p1026_p9 = scmp.eq.s32.totalorder %s728_s1, 1  ;;  %s895_s24 = smov [#allocation10]  }
 0x3a9   : > { %s669_s11 = sshll.u32 %s895_s24, 4  ;;  %s670_s11 = int_to_ptr.vmem [resolvable:$true] %s669_s11 }
 0x3aa   : > { %s831_s12 = scalar_lea.vmem %s670_s11, 128  ;;  %p838_p13 = scmp.lt.s32.totalorder %s670_s11, %s670_s11 }
 0x3ab   : > { %p832_p10 = scmp.ne.s32.totalorder %s670_s11, %s831_s12  ;;  %p839_p0 = scmp.lt.s32.totalorder %s831_s12, %s831_s12 }
 0x3ad   : > { %p833_p11 = pnand %p832_p10, %p1026_p9  ;;  %p840_p1 = por %p839_p0, %p838_p13 }
 0x3af   : > { %p834_p12 = pneg %p833_p11 }
 0x3b1   : > { %p841_p2 = pnand %p840_p1, %p834_p12 }
 0x3b3   : > { %844 = shalt.err (!%p841_p2)
}
 0x3b4   : > { %s845_s1 = scalar_lea.hbm %s1066_s7, 128 }
 0x3b5   : > { %p846_p3 = scmp.ne.s32.totalorder %s1066_s7, %s845_s1  ;;  %p851_p6 = scmp.lt.u32.totalorder %s845_s1, %s1066_s7 }
 0x3b7   : > { %p847_p4 = pnand %p846_p3, %p1026_p9 }
 0x3b9   : > { %p848_p5 = pneg %p847_p4 }
 0x3bb   : > { %p853_p7 = pnand %p851_p6, %p848_p5 }
 0x3bd   : > { %856 = shalt.err (!%p853_p7)
}
 0x3be   : > { %764 = dma.vmem_to_hbm [thread:$0]  (%p1026_p9), %s670_s11, 128, %s1066_s7, [#allocation11]  }
 0x3bf   : > { %872 = dma.done.wait (%p1026_p9), [#allocation11], 128  }
 0x3c0   : > { %874 = vsyncadd (%p1026_p9), [#allocation11], 4294967168 }
 0x3c1 PF: > { %s26_s26 = sadd.s32 1, %s885_s26   ;;  %s1070_s24 = smov %s881_s25 }
 0x3c2   : > { %p23_p8 = scmp.ge.s32.totalorder %s26_s26, 4   ;;  %s1071_s25 = smov %s1073_s2 }
 0x3c4   :  { %25 = sbr.rel (!%p23_p8) target bundleno = 22 (0x16), region = 79 }
 0x3cb   :  { %682 = vsyncpa [#allocation11], 1 }
 0x3cc   :  { %684 = vsyncpa [#allocation11 + $0x1], 1 }

</bundles_post_ra>
